<compile_context>
chip_gen: v5e
topology: v5e:2x2
jax: 0.10.0
libtpu: 0.0.40
codegen_flags: <defaults>
</compile_context>

<pallas_src>
import functools
import math

import jax
import jax.numpy as jnp
from jax import lax
from jax.experimental import pallas as pl
from jax.experimental.pallas import tpu as pltpu


# ---------------------------------------------------------------------------
# Fused kernel: projections + per-head attention + output projection,
# one (batch, query-tile) grid point per invocation.
# ---------------------------------------------------------------------------
def mha_fused_kernel(q_ref, k_ref, v_ref,
                     wq_ref, wk_ref, wv_ref, wo_ref,
                     bq_ref, bk_ref, bv_ref, bo_ref,
                     bias_ref, o_ref,
                     qf_ref, kf_ref, vf_ref, cat_ref,
                     *, num_heads, d_attn):
    q = q_ref[0].astype(jnp.bfloat16)          # (TQ, D)
    k = k_ref[0].astype(jnp.bfloat16)          # (S,  D)
    v = v_ref[0].astype(jnp.bfloat16)          # (S,  D)

    # Fused full-width projections: all heads in one deep-K MXU matmul each
    # (f32 accumulation).  1/sqrt(d_attn) is already folded into wq/bq.
    qf_ref[...] = (jnp.dot(q, wq_ref[...], preferred_element_type=jnp.float32)
                   + bq_ref[...]).astype(jnp.bfloat16)                # (TQ, D)
    kf_ref[...] = (jnp.dot(k, wk_ref[...], preferred_element_type=jnp.float32)
                   + bk_ref[...]).astype(jnp.bfloat16)                # (S, D)
    vf_ref[...] = (jnp.dot(v, wv_ref[...], preferred_element_type=jnp.float32)
                   + bv_ref[...]).astype(jnp.bfloat16)                # (S, D)

    neg_bias = bias_ref[...]                   # (1, S) additive mask bias, f32

    # Per-head attention.  Head operands are static VMEM-ref slices (no
    # relayout of a live (S, D) vreg array per head); head outputs land in the
    # concatenated-heads scratch so the output Linear runs as ONE full-depth
    # matmul after the loop.
    for h in range(num_heads):
        sl = pl.ds(h * d_attn, d_attn)
        Qh = qf_ref[:, sl]                     # (TQ, da) bf16
        Kh = kf_ref[:, sl]                     # (S,  da) bf16
        Vh = vf_ref[:, sl]                     # (S,  da) bf16

        # Q @ K^T without materializing a transpose: contract the last dims.
        scores = lax.dot_general(
            Qh, Kh, (((1,), (1,)), ((), ())),
            preferred_element_type=jnp.float32)                       # (TQ, S)
        scores = scores + neg_bias             # masked keys -> -1e30

        # Numerically stable softmax, all f32 (matches F.softmax; v5e-safe).
        scores = scores - jnp.max(scores, axis=-1, keepdims=True)
        p = jnp.exp(scores)
        attn = p * pl.reciprocal(jnp.sum(p, axis=-1, keepdims=True), approx=True)

        head = jnp.dot(attn.astype(jnp.bfloat16), Vh,
                       preferred_element_type=jnp.float32)            # (TQ, da)
        cat_ref[:, sl] = head.astype(jnp.bfloat16)

    # torch.cat over heads + nn.Linear(d_model, d_model), fused into a single
    # (TQ, D) @ (D, D) matmul (full-K contraction fills the MXU) + bias.
    out = jnp.dot(cat_ref[...], wo_ref[...],
                  preferred_element_type=jnp.float32) + bo_ref[...]
    o_ref[0, :, :] = out                       # lane-dense (last dim = d_model)


# ---------------------------------------------------------------------------
# Wrapper
# ---------------------------------------------------------------------------
def multi_headed_attention(q, k, v, params, mask=None):
    B, S, D = q.shape
    H = params["num_heads"]
    d_attn = D // H
    inv_scale = 1.0 / math.sqrt(d_attn)

    # Query tiling (keeps the scores block (TQ, S) instead of (S, S) and gives
    # more grid points for pipelining / megacore when B is small).
    TQ = min(S, 256)
    nq = pl.cdiv(S, TQ)

    # Mask -> additive bias, computed ONCE outside the kernel (hoisted).
    if mask is None:
        neg_bias = jnp.zeros((1, S), jnp.float32)
    else:
        m = jnp.asarray(mask, jnp.float32).reshape(1, S)
        neg_bias = jnp.where(m == 0.0, jnp.float32(-1e30), jnp.float32(0.0))

    # Weights cast to bf16 once (MXU-native, half the DMA / VMEM footprint);
    # 1/sqrt(d_attn) folded into the Q projection.  Biases stay f32 (added to
    # the f32 accumulator; negligible bandwidth).
    wq = (params["wq"] * inv_scale).astype(jnp.bfloat16)
    bq = params["bq"] * inv_scale
    wk = params["wk"].astype(jnp.bfloat16)
    wv = params["wv"].astype(jnp.bfloat16)
    wo = params["w_out"].astype(jnp.bfloat16)
    bk, bv, bo = params["bk"], params["bv"], params["b_out"]

    kernel = functools.partial(mha_fused_kernel, num_heads=H, d_attn=d_attn)

    return pl.pallas_call(
        kernel,
        out_shape=jax.ShapeDtypeStruct((B, S, D), jnp.float32),
        grid=(B, nq),
        in_specs=[
            pl.BlockSpec((1, TQ, D), lambda b, qi: (b, qi, 0)),   # q tile
            pl.BlockSpec((1, S, D), lambda b, qi: (b, 0, 0)),     # k (all keys)
            pl.BlockSpec((1, S, D), lambda b, qi: (b, 0, 0)),     # v
            pl.BlockSpec((D, D), lambda b, qi: (0, 0)),           # Wq (scaled, bf16)
            pl.BlockSpec((D, D), lambda b, qi: (0, 0)),           # Wk
            pl.BlockSpec((D, D), lambda b, qi: (0, 0)),           # Wv
            pl.BlockSpec((D, D), lambda b, qi: (0, 0)),           # W_out
            pl.BlockSpec((1, D), lambda b, qi: (0, 0)),           # bq (scaled)
            pl.BlockSpec((1, D), lambda b, qi: (0, 0)),           # bk
            pl.BlockSpec((1, D), lambda b, qi: (0, 0)),           # bv
            pl.BlockSpec((1, D), lambda b, qi: (0, 0)),           # b_out
            pl.BlockSpec((1, S), lambda b, qi: (0, 0)),           # additive mask bias
        ],
        out_specs=pl.BlockSpec((1, TQ, D), lambda b, qi: (b, qi, 0)),
        scratch_shapes=[
            pltpu.VMEM((TQ, D), jnp.bfloat16),   # Qf (scale folded in)
            pltpu.VMEM((S, D), jnp.bfloat16),    # Kf
            pltpu.VMEM((S, D), jnp.bfloat16),    # Vf
            pltpu.VMEM((TQ, D), jnp.bfloat16),   # concatenated head outputs
        ],
        compiler_params=pltpu.CompilerParams(
            dimension_semantics=("parallel", "parallel"),
            vmem_limit_bytes=48 * 1024 * 1024),   # safe on v5e/v6e/v7x
    )(q, k, v, wq, wk, wv, wo, bq, bk, bv, bo, neg_bias)


# ---------------------------------------------------------------------------
# Deterministic parameter init (PyTorch nn.Linear style: U(-1/sqrt(fan_in), +)).
# Per-head Linear weights are stored transposed ((in, out)) and fused: column
# block h of wq/wk/wv (and row block h of w_out) corresponds to head h.
# ---------------------------------------------------------------------------
def init_params(key, d_model, num_heads):
    keys = jax.random.split(key, 8)
    bound = 1.0 / math.sqrt(d_model)

    def u(k, shape):
        return jax.random.uniform(k, shape, jnp.float32, -bound, bound)

    return {
        "num_heads": num_heads,
        "wq": u(keys[0], (d_model, d_model)),
        "bq": u(keys[1], (1, d_model)),
        "wk": u(keys[2], (d_model, d_model)),
        "bk": u(keys[3], (1, d_model)),
        "wv": u(keys[4], (d_model, d_model)),
        "bv": u(keys[5], (1, d_model)),
        "w_out": u(keys[6], (d_model, d_model)),
        "b_out": u(keys[7], (1, d_model)),
    }


# ---------------------------------------------------------------------------
# Plain-JAX f32 reference (mirrors the PyTorch forward per-head loop)
# ---------------------------------------------------------------------------
def reference(q, k, v, params, mask=None):
    H = params["num_heads"]
    D = q.shape[-1]
    d_attn = D // H
    outs = []
    for h in range(H):
        sl = slice(h * d_attn, (h + 1) * d_attn)
        Q = q @ params["wq"][:, sl] + params["bq"][:, sl]
        K = k @ params["wk"][:, sl] + params["bk"][:, sl]
        V = v @ params["wv"][:, sl] + params["bv"][:, sl]
        attn = jnp.einsum("bqd,bkd->bqk", Q, K) / math.sqrt(d_attn)
        if mask is not None:
            attn = jnp.where(mask.reshape(1, 1, -1) == 0, -jnp.inf, attn)
        attn = jax.nn.softmax(attn, axis=-1)
        outs.append(jnp.einsum("bqk,bkd->bqd", attn, V))
    concat = jnp.concatenate(outs, axis=-1)
    return concat @ params["w_out"] + params["b_out"]


if __name__ == "__main__":
    B, S, d_model, num_heads = 2, 8, 32, 4

    key = jax.random.PRNGKey(0)
    kq, kk, kv, kp = jax.random.split(key, 4)
    q = jax.random.normal(kq, (B, S, d_model), jnp.float32)
    k = jax.random.normal(kk, (B, S, d_model), jnp.float32)
    v = jax.random.normal(kv, (B, S, d_model), jnp.float32)
    params = init_params(kp, d_model, num_heads)

    # Unmasked path.
    out = jax.block_until_ready(multi_headed_attention(q, k, v, params, mask=None))
    ref = reference(q, k, v, params, mask=None)
    assert out.shape == (B, S, d_model)
    # bf16 matmul operands + approx reciprocal -> looser tolerance than pure f32.
    assert jnp.allclose(out, ref, rtol=5e-2, atol=5e-2), \
        float(jnp.max(jnp.abs(out - ref)))

    # Masked path (last two key positions dropped).
    mask = jnp.array([1, 1, 1, 1, 1, 1, 0, 0], jnp.float32)
    out_m = jax.block_until_ready(multi_headed_attention(q, k, v, params, mask=mask))
    ref_m = reference(q, k, v, params, mask=mask)
    assert jnp.allclose(out_m, ref_m, rtol=5e-2, atol=5e-2), \
        float(jnp.max(jnp.abs(out_m - ref_m)))

    print("KERNEL_OK")
</pallas_src>

<mosaic_0001>
module attributes {stable_mosaic.version = 11 : i64} {
  func.func @mha_fused_kernel(%arg0: i32, %arg1: i32, %arg2: memref<1x8x32xf32, #tpu.memory_space<vmem>>, %arg3: memref<1x8x32xf32, #tpu.memory_space<vmem>>, %arg4: memref<1x8x32xf32, #tpu.memory_space<vmem>>, %arg5: memref<32x32xbf16, #tpu.memory_space<vmem>>, %arg6: memref<32x32xbf16, #tpu.memory_space<vmem>>, %arg7: memref<32x32xbf16, #tpu.memory_space<vmem>>, %arg8: memref<32x32xbf16, #tpu.memory_space<vmem>>, %arg9: memref<1x32xf32, #tpu.memory_space<vmem>>, %arg10: memref<1x32xf32, #tpu.memory_space<vmem>>, %arg11: memref<1x32xf32, #tpu.memory_space<vmem>>, %arg12: memref<1x32xf32, #tpu.memory_space<vmem>>, %arg13: memref<1x8xf32, #tpu.memory_space<vmem>>, %arg14: memref<1x8x32xf32, #tpu.memory_space<vmem>>, %arg15: memref<8x32xbf16, #tpu.memory_space<vmem>>, %arg16: memref<8x32xbf16, #tpu.memory_space<vmem>>, %arg17: memref<8x32xbf16, #tpu.memory_space<vmem>>, %arg18: memref<8x32xbf16, #tpu.memory_space<vmem>>) attributes {dimension_semantics = [#tpu.dimension_semantics<parallel>, #tpu.dimension_semantics<parallel>], iteration_bounds = array<i64: 2, 1>, scalar_prefetch = 0 : i64, scratch_operands = 4 : i64, tpu.core_type = #tpu.core_type<tc>, window_params = [{transform_indices = @transform_0, window_bounds = array<i64: 1, 8, 32>}, {transform_indices = @transform_1, window_bounds = array<i64: 1, 8, 32>}, {transform_indices = @transform_2, window_bounds = array<i64: 1, 8, 32>}, {pipeline_mode = #tpu.pipeline_mode<synchronous>, transform_indices = @transform_3, window_bounds = array<i64: 32, 32>}, {pipeline_mode = #tpu.pipeline_mode<synchronous>, transform_indices = @transform_4, window_bounds = array<i64: 32, 32>}, {pipeline_mode = #tpu.pipeline_mode<synchronous>, transform_indices = @transform_5, window_bounds = array<i64: 32, 32>}, {pipeline_mode = #tpu.pipeline_mode<synchronous>, transform_indices = @transform_6, window_bounds = array<i64: 32, 32>}, {pipeline_mode = #tpu.pipeline_mode<synchronous>, transform_indices = @transform_7, window_bounds = array<i64: 1, 32>}, {pipeline_mode = #tpu.pipeline_mode<synchronous>, transform_indices = @transform_8, window_bounds = array<i64: 1, 32>}, {pipeline_mode = #tpu.pipeline_mode<synchronous>, transform_indices = @transform_9, window_bounds = array<i64: 1, 32>}, {pipeline_mode = #tpu.pipeline_mode<synchronous>, transform_indices = @transform_10, window_bounds = array<i64: 1, 32>}, {pipeline_mode = #tpu.pipeline_mode<synchronous>, transform_indices = @transform_11, window_bounds = array<i64: 1, 8>}, {transform_indices = @transform_12, window_bounds = array<i64: 1, 8, 32>}]} {
    %c0 = arith.constant 0 : index
    %c0_0 = arith.constant 0 : index
    %c0_1 = arith.constant 0 : index
    %0 = vector.load %arg2[%c0, %c0_0, %c0_1] : memref<1x8x32xf32, #tpu.memory_space<vmem>>, vector<1x8x32xf32>
    %1 = vector.shape_cast %0 : vector<1x8x32xf32> to vector<8x32xf32>
    %2 = arith.truncf %1 : vector<8x32xf32> to vector<8x32xbf16>
    %c0_2 = arith.constant 0 : index
    %c0_3 = arith.constant 0 : index
    %c0_4 = arith.constant 0 : index
    %3 = vector.load %arg3[%c0_2, %c0_3, %c0_4] : memref<1x8x32xf32, #tpu.memory_space<vmem>>, vector<1x8x32xf32>
    %4 = vector.shape_cast %3 : vector<1x8x32xf32> to vector<8x32xf32>
    %5 = arith.truncf %4 : vector<8x32xf32> to vector<8x32xbf16>
    %c0_5 = arith.constant 0 : index
    %c0_6 = arith.constant 0 : index
    %c0_7 = arith.constant 0 : index
    %6 = vector.load %arg4[%c0_5, %c0_6, %c0_7] : memref<1x8x32xf32, #tpu.memory_space<vmem>>, vector<1x8x32xf32>
    %7 = vector.shape_cast %6 : vector<1x8x32xf32> to vector<8x32xf32>
    %8 = arith.truncf %7 : vector<8x32xf32> to vector<8x32xbf16>
    %c0_8 = arith.constant 0 : index
    %c0_9 = arith.constant 0 : index
    %9 = vector.load %arg5[%c0_8, %c0_9] : memref<32x32xbf16, #tpu.memory_space<vmem>>, vector<32x32xbf16>
    %cst = arith.constant dense<0.000000e+00> : vector<8x32xf32>
    %10 = tpu.matmul %2, %9, %cst {dimension_numbers = #tpu.dot_dimension_numbers<[1], [0], [0], [1], [0, 0, 1, 1], [], []>} : vector<8x32xbf16>, vector<32x32xbf16>, vector<8x32xf32> -> vector<8x32xf32>
    %c0_10 = arith.constant 0 : index
    %c0_11 = arith.constant 0 : index
    %11 = vector.load %arg9[%c0_10, %c0_11] : memref<1x32xf32, #tpu.memory_space<vmem>>, vector<1x32xf32>
    %12 = vector.broadcast %11 : vector<1x32xf32> to vector<8x32xf32>
    %13 = arith.addf %10, %12 : vector<8x32xf32>
    %14 = arith.truncf %13 : vector<8x32xf32> to vector<8x32xbf16>
    %c0_12 = arith.constant 0 : index
    %c0_13 = arith.constant 0 : index
    %15 = vector.load %arg15[%c0_12, %c0_13] : memref<8x32xbf16, #tpu.memory_space<vmem>>, vector<8x32xbf16>
    tpu.vector_store %arg15[%c0_12, %c0_13], %14 {strides = array<i32>} : memref<8x32xbf16, #tpu.memory_space<vmem>>, vector<8x32xbf16>,
    %c0_14 = arith.constant 0 : index
    %c0_15 = arith.constant 0 : index
    %16 = vector.load %arg6[%c0_14, %c0_15] : memref<32x32xbf16, #tpu.memory_space<vmem>>, vector<32x32xbf16>
    %cst_16 = arith.constant dense<0.000000e+00> : vector<8x32xf32>
    %17 = tpu.matmul %5, %16, %cst_16 {dimension_numbers = #tpu.dot_dimension_numbers<[1], [0], [0], [1], [0, 0, 1, 1], [], []>} : vector<8x32xbf16>, vector<32x32xbf16>, vector<8x32xf32> -> vector<8x32xf32>
    %c0_17 = arith.constant 0 : index
    %c0_18 = arith.constant 0 : index
    %18 = vector.load %arg10[%c0_17, %c0_18] : memref<1x32xf32, #tpu.memory_space<vmem>>, vector<1x32xf32>
    %19 = vector.broadcast %18 : vector<1x32xf32> to vector<8x32xf32>
    %20 = arith.addf %17, %19 : vector<8x32xf32>
    %21 = arith.truncf %20 : vector<8x32xf32> to vector<8x32xbf16>
    %c0_19 = arith.constant 0 : index
    %c0_20 = arith.constant 0 : index
    %22 = vector.load %arg16[%c0_19, %c0_20] : memref<8x32xbf16, #tpu.memory_space<vmem>>, vector<8x32xbf16>
    tpu.vector_store %arg16[%c0_19, %c0_20], %21 {strides = array<i32>} : memref<8x32xbf16, #tpu.memory_space<vmem>>, vector<8x32xbf16>,
    %c0_21 = arith.constant 0 : index
    %c0_22 = arith.constant 0 : index
    %23 = vector.load %arg7[%c0_21, %c0_22] : memref<32x32xbf16, #tpu.memory_space<vmem>>, vector<32x32xbf16>
    %cst_23 = arith.constant dense<0.000000e+00> : vector<8x32xf32>
    %24 = tpu.matmul %8, %23, %cst_23 {dimension_numbers = #tpu.dot_dimension_numbers<[1], [0], [0], [1], [0, 0, 1, 1], [], []>} : vector<8x32xbf16>, vector<32x32xbf16>, vector<8x32xf32> -> vector<8x32xf32>
    %c0_24 = arith.constant 0 : index
    %c0_25 = arith.constant 0 : index
    %25 = vector.load %arg11[%c0_24, %c0_25] : memref<1x32xf32, #tpu.memory_space<vmem>>, vector<1x32xf32>
    %26 = vector.broadcast %25 : vector<1x32xf32> to vector<8x32xf32>
    %27 = arith.addf %24, %26 : vector<8x32xf32>
    %28 = arith.truncf %27 : vector<8x32xf32> to vector<8x32xbf16>
    %c0_26 = arith.constant 0 : index
    %c0_27 = arith.constant 0 : index
    %29 = vector.load %arg17[%c0_26, %c0_27] : memref<8x32xbf16, #tpu.memory_space<vmem>>, vector<8x32xbf16>
    tpu.vector_store %arg17[%c0_26, %c0_27], %28 {strides = array<i32>} : memref<8x32xbf16, #tpu.memory_space<vmem>>, vector<8x32xbf16>,
    %c0_28 = arith.constant 0 : index
    %c0_29 = arith.constant 0 : index
    %30 = vector.load %arg13[%c0_28, %c0_29] : memref<1x8xf32, #tpu.memory_space<vmem>>, vector<1x8xf32>
    %c0_30 = arith.constant 0 : index
    %c0_31 = arith.constant 0 : index
    %31 = vector.load %arg15[%c0_30, %c0_31] : memref<8x32xbf16, #tpu.memory_space<vmem>>, vector<8x8xbf16>
    %c0_32 = arith.constant 0 : index
    %c0_33 = arith.constant 0 : index
    %32 = vector.load %arg16[%c0_32, %c0_33] : memref<8x32xbf16, #tpu.memory_space<vmem>>, vector<8x8xbf16>
    %c0_34 = arith.constant 0 : index
    %c0_35 = arith.constant 0 : index
    %33 = vector.load %arg17[%c0_34, %c0_35] : memref<8x32xbf16, #tpu.memory_space<vmem>>, vector<8x8xbf16>
    %cst_36 = arith.constant dense<0.000000e+00> : vector<8x8xf32>
    %34 = tpu.matmul %31, %32, %cst_36 {dimension_numbers = #tpu.dot_dimension_numbers<[1], [1], [0], [0], [0, 0, 1, 0], [], []>} : vector<8x8xbf16>, vector<8x8xbf16>, vector<8x8xf32> -> vector<8x8xf32>
    %35 = vector.broadcast %30 : vector<1x8xf32> to vector<8x8xf32>
    %36 = arith.addf %34, %35 : vector<8x8xf32>
    %cst_37 = arith.constant dense<0xFF800000> : vector<8xf32>
    %37 = vector.multi_reduction <maximumf>, %36, %cst_37 [1] : vector<8x8xf32> to vector<8xf32>
    %38 = vector.shape_cast %37 : vector<8xf32> to vector<8x1xf32>
    %39 = vector.broadcast %38 : vector<8x1xf32> to vector<8x8xf32>
    %40 = arith.subf %36, %39 : vector<8x8xf32>
    %41 = math.exp %40 : vector<8x8xf32>
    %cst_38 = arith.constant dense<0.000000e+00> : vector<8xf32>
    %42 = vector.multi_reduction <add>, %41, %cst_38 [1] : vector<8x8xf32> to vector<8xf32>
    %43 = vector.shape_cast %42 : vector<8xf32> to vector<8x1xf32>
    %44 = tpu.reciprocal %43 {approx = true} : vector<8x1xf32> -> vector<8x1xf32>
    %45 = vector.broadcast %44 : vector<8x1xf32> to vector<8x8xf32>
    %46 = arith.mulf %41, %45 : vector<8x8xf32>
    %47 = arith.truncf %46 : vector<8x8xf32> to vector<8x8xbf16>
    %cst_39 = arith.constant dense<0.000000e+00> : vector<8x8xf32>
    %48 = tpu.matmul %47, %33, %cst_39 {dimension_numbers = #tpu.dot_dimension_numbers<[1], [0], [0], [1], [0, 0, 1, 1], [], []>} : vector<8x8xbf16>, vector<8x8xbf16>, vector<8x8xf32> -> vector<8x8xf32>
    %49 = arith.truncf %48 : vector<8x8xf32> to vector<8x8xbf16>
    %c0_40 = arith.constant 0 : index
    %c0_41 = arith.constant 0 : index
    %50 = vector.load %arg18[%c0_40, %c0_41] : memref<8x32xbf16, #tpu.memory_space<vmem>>, vector<8x8xbf16>
    tpu.vector_store %arg18[%c0_40, %c0_41], %49 {strides = array<i32>} : memref<8x32xbf16, #tpu.memory_space<vmem>>, vector<8x8xbf16>,
    %c0_42 = arith.constant 0 : index
    %c8 = arith.constant 8 : index
    %51 = vector.load %arg15[%c0_42, %c8] : memref<8x32xbf16, #tpu.memory_space<vmem>>, vector<8x8xbf16>
    %c0_43 = arith.constant 0 : index
    %c8_44 = arith.constant 8 : index
    %52 = vector.load %arg16[%c0_43, %c8_44] : memref<8x32xbf16, #tpu.memory_space<vmem>>, vector<8x8xbf16>
    %c0_45 = arith.constant 0 : index
    %c8_46 = arith.constant 8 : index
    %53 = vector.load %arg17[%c0_45, %c8_46] : memref<8x32xbf16, #tpu.memory_space<vmem>>, vector<8x8xbf16>
    %cst_47 = arith.constant dense<0.000000e+00> : vector<8x8xf32>
    %54 = tpu.matmul %51, %52, %cst_47 {dimension_numbers = #tpu.dot_dimension_numbers<[1], [1], [0], [0], [0, 0, 1, 0], [], []>} : vector<8x8xbf16>, vector<8x8xbf16>, vector<8x8xf32> -> vector<8x8xf32>
    %55 = vector.broadcast %30 : vector<1x8xf32> to vector<8x8xf32>
    %56 = arith.addf %54, %55 : vector<8x8xf32>
    %cst_48 = arith.constant dense<0xFF800000> : vector<8xf32>
    %57 = vector.multi_reduction <maximumf>, %56, %cst_48 [1] : vector<8x8xf32> to vector<8xf32>
    %58 = vector.shape_cast %57 : vector<8xf32> to vector<8x1xf32>
    %59 = vector.broadcast %58 : vector<8x1xf32> to vector<8x8xf32>
    %60 = arith.subf %56, %59 : vector<8x8xf32>
    %61 = math.exp %60 : vector<8x8xf32>
    %cst_49 = arith.constant dense<0.000000e+00> : vector<8xf32>
    %62 = vector.multi_reduction <add>, %61, %cst_49 [1] : vector<8x8xf32> to vector<8xf32>
    %63 = vector.shape_cast %62 : vector<8xf32> to vector<8x1xf32>
    %64 = tpu.reciprocal %63 {approx = true} : vector<8x1xf32> -> vector<8x1xf32>
    %65 = vector.broadcast %64 : vector<8x1xf32> to vector<8x8xf32>
    %66 = arith.mulf %61, %65 : vector<8x8xf32>
    %67 = arith.truncf %66 : vector<8x8xf32> to vector<8x8xbf16>
    %cst_50 = arith.constant dense<0.000000e+00> : vector<8x8xf32>
    %68 = tpu.matmul %67, %53, %cst_50 {dimension_numbers = #tpu.dot_dimension_numbers<[1], [0], [0], [1], [0, 0, 1, 1], [], []>} : vector<8x8xbf16>, vector<8x8xbf16>, vector<8x8xf32> -> vector<8x8xf32>
    %69 = arith.truncf %68 : vector<8x8xf32> to vector<8x8xbf16>
    %c0_51 = arith.constant 0 : index
    %c8_52 = arith.constant 8 : index
    %70 = vector.load %arg18[%c0_51, %c8_52] : memref<8x32xbf16, #tpu.memory_space<vmem>>, vector<8x8xbf16>
    tpu.vector_store %arg18[%c0_51, %c8_52], %69 {strides = array<i32>} : memref<8x32xbf16, #tpu.memory_space<vmem>>, vector<8x8xbf16>,
    %c0_53 = arith.constant 0 : index
    %c16 = arith.constant 16 : index
    %71 = vector.load %arg15[%c0_53, %c16] : memref<8x32xbf16, #tpu.memory_space<vmem>>, vector<8x8xbf16>
    %c0_54 = arith.constant 0 : index
    %c16_55 = arith.constant 16 : index
    %72 = vector.load %arg16[%c0_54, %c16_55] : memref<8x32xbf16, #tpu.memory_space<vmem>>, vector<8x8xbf16>
    %c0_56 = arith.constant 0 : index
    %c16_57 = arith.constant 16 : index
    %73 = vector.load %arg17[%c0_56, %c16_57] : memref<8x32xbf16, #tpu.memory_space<vmem>>, vector<8x8xbf16>
    %cst_58 = arith.constant dense<0.000000e+00> : vector<8x8xf32>
    %74 = tpu.matmul %71, %72, %cst_58 {dimension_numbers = #tpu.dot_dimension_numbers<[1], [1], [0], [0], [0, 0, 1, 0], [], []>} : vector<8x8xbf16>, vector<8x8xbf16>, vector<8x8xf32> -> vector<8x8xf32>
    %75 = vector.broadcast %30 : vector<1x8xf32> to vector<8x8xf32>
    %76 = arith.addf %74, %75 : vector<8x8xf32>
    %cst_59 = arith.constant dense<0xFF800000> : vector<8xf32>
    %77 = vector.multi_reduction <maximumf>, %76, %cst_59 [1] : vector<8x8xf32> to vector<8xf32>
    %78 = vector.shape_cast %77 : vector<8xf32> to vector<8x1xf32>
    %79 = vector.broadcast %78 : vector<8x1xf32> to vector<8x8xf32>
    %80 = arith.subf %76, %79 : vector<8x8xf32>
    %81 = math.exp %80 : vector<8x8xf32>
    %cst_60 = arith.constant dense<0.000000e+00> : vector<8xf32>
    %82 = vector.multi_reduction <add>, %81, %cst_60 [1] : vector<8x8xf32> to vector<8xf32>
    %83 = vector.shape_cast %82 : vector<8xf32> to vector<8x1xf32>
    %84 = tpu.reciprocal %83 {approx = true} : vector<8x1xf32> -> vector<8x1xf32>
    %85 = vector.broadcast %84 : vector<8x1xf32> to vector<8x8xf32>
    %86 = arith.mulf %81, %85 : vector<8x8xf32>
    %87 = arith.truncf %86 : vector<8x8xf32> to vector<8x8xbf16>
    %cst_61 = arith.constant dense<0.000000e+00> : vector<8x8xf32>
    %88 = tpu.matmul %87, %73, %cst_61 {dimension_numbers = #tpu.dot_dimension_numbers<[1], [0], [0], [1], [0, 0, 1, 1], [], []>} : vector<8x8xbf16>, vector<8x8xbf16>, vector<8x8xf32> -> vector<8x8xf32>
    %89 = arith.truncf %88 : vector<8x8xf32> to vector<8x8xbf16>
    %c0_62 = arith.constant 0 : index
    %c16_63 = arith.constant 16 : index
    %90 = vector.load %arg18[%c0_62, %c16_63] : memref<8x32xbf16, #tpu.memory_space<vmem>>, vector<8x8xbf16>
    tpu.vector_store %arg18[%c0_62, %c16_63], %89 {strides = array<i32>} : memref<8x32xbf16, #tpu.memory_space<vmem>>, vector<8x8xbf16>,
    %c0_64 = arith.constant 0 : index
    %c24 = arith.constant 24 : index
    %91 = vector.load %arg15[%c0_64, %c24] : memref<8x32xbf16, #tpu.memory_space<vmem>>, vector<8x8xbf16>
    %c0_65 = arith.constant 0 : index
    %c24_66 = arith.constant 24 : index
    %92 = vector.load %arg16[%c0_65, %c24_66] : memref<8x32xbf16, #tpu.memory_space<vmem>>, vector<8x8xbf16>
    %c0_67 = arith.constant 0 : index
    %c24_68 = arith.constant 24 : index
    %93 = vector.load %arg17[%c0_67, %c24_68] : memref<8x32xbf16, #tpu.memory_space<vmem>>, vector<8x8xbf16>
    %cst_69 = arith.constant dense<0.000000e+00> : vector<8x8xf32>
    %94 = tpu.matmul %91, %92, %cst_69 {dimension_numbers = #tpu.dot_dimension_numbers<[1], [1], [0], [0], [0, 0, 1, 0], [], []>} : vector<8x8xbf16>, vector<8x8xbf16>, vector<8x8xf32> -> vector<8x8xf32>
    %95 = vector.broadcast %30 : vector<1x8xf32> to vector<8x8xf32>
    %96 = arith.addf %94, %95 : vector<8x8xf32>
    %cst_70 = arith.constant dense<0xFF800000> : vector<8xf32>
    %97 = vector.multi_reduction <maximumf>, %96, %cst_70 [1] : vector<8x8xf32> to vector<8xf32>
    %98 = vector.shape_cast %97 : vector<8xf32> to vector<8x1xf32>
    %99 = vector.broadcast %98 : vector<8x1xf32> to vector<8x8xf32>
    %100 = arith.subf %96, %99 : vector<8x8xf32>
    %101 = math.exp %100 : vector<8x8xf32>
    %cst_71 = arith.constant dense<0.000000e+00> : vector<8xf32>
    %102 = vector.multi_reduction <add>, %101, %cst_71 [1] : vector<8x8xf32> to vector<8xf32>
    %103 = vector.shape_cast %102 : vector<8xf32> to vector<8x1xf32>
    %104 = tpu.reciprocal %103 {approx = true} : vector<8x1xf32> -> vector<8x1xf32>
    %105 = vector.broadcast %104 : vector<8x1xf32> to vector<8x8xf32>
    %106 = arith.mulf %101, %105 : vector<8x8xf32>
    %107 = arith.truncf %106 : vector<8x8xf32> to vector<8x8xbf16>
    %cst_72 = arith.constant dense<0.000000e+00> : vector<8x8xf32>
    %108 = tpu.matmul %107, %93, %cst_72 {dimension_numbers = #tpu.dot_dimension_numbers<[1], [0], [0], [1], [0, 0, 1, 1], [], []>} : vector<8x8xbf16>, vector<8x8xbf16>, vector<8x8xf32> -> vector<8x8xf32>
    %109 = arith.truncf %108 : vector<8x8xf32> to vector<8x8xbf16>
    %c0_73 = arith.constant 0 : index
    %c24_74 = arith.constant 24 : index
    %110 = vector.load %arg18[%c0_73, %c24_74] : memref<8x32xbf16, #tpu.memory_space<vmem>>, vector<8x8xbf16>
    tpu.vector_store %arg18[%c0_73, %c24_74], %109 {strides = array<i32>} : memref<8x32xbf16, #tpu.memory_space<vmem>>, vector<8x8xbf16>,
    %c0_75 = arith.constant 0 : index
    %c0_76 = arith.constant 0 : index
    %111 = vector.load %arg18[%c0_75, %c0_76] : memref<8x32xbf16, #tpu.memory_space<vmem>>, vector<8x32xbf16>
    %c0_77 = arith.constant 0 : index
    %c0_78 = arith.constant 0 : index
    %112 = vector.load %arg8[%c0_77, %c0_78] : memref<32x32xbf16, #tpu.memory_space<vmem>>, vector<32x32xbf16>
    %cst_79 = arith.constant dense<0.000000e+00> : vector<8x32xf32>
    %113 = tpu.matmul %111, %112, %cst_79 {dimension_numbers = #tpu.dot_dimension_numbers<[1], [0], [0], [1], [0, 0, 1, 1], [], []>} : vector<8x32xbf16>, vector<32x32xbf16>, vector<8x32xf32> -> vector<8x32xf32>
    %c0_80 = arith.constant 0 : index
    %c0_81 = arith.constant 0 : index
    %114 = vector.load %arg12[%c0_80, %c0_81] : memref<1x32xf32, #tpu.memory_space<vmem>>, vector<1x32xf32>
    %115 = vector.broadcast %114 : vector<1x32xf32> to vector<8x32xf32>
    %116 = arith.addf %113, %115 : vector<8x32xf32>
    %c0_82 = arith.constant 0 : index
    %c0_83 = arith.constant 0 : index
    %c0_84 = arith.constant 0 : index
    %117 = vector.load %arg14[%c0_82, %c0_83, %c0_84] : memref<1x8x32xf32, #tpu.memory_space<vmem>>, vector<1x8x32xf32>
    %118 = vector.shape_cast %117 : vector<1x8x32xf32> to vector<8x32xf32>
    %119 = vector.shape_cast %116 : vector<8x32xf32> to vector<1x8x32xf32>
    tpu.vector_store %arg14[%c0_82, %c0_83, %c0_84], %119 {strides = array<i32>} : memref<1x8x32xf32, #tpu.memory_space<vmem>>, vector<1x8x32xf32>,
    return
  }
  func.func @transform_0(%arg0: i32, %arg1: i32) -> (i32, i32, i32) {
    %c0_i32 = arith.constant 0 : i32
    %c0_i32_0 = arith.constant 0 : i32
    return %arg0, %arg1, %c0_i32 : i32, i32, i32
  }
  func.func @transform_1(%arg0: i32, %arg1: i32) -> (i32, i32, i32) {
    %c0_i32 = arith.constant 0 : i32
    %c0_i32_0 = arith.constant 0 : i32
    %c0_i32_1 = arith.constant 0 : i32
    return %arg0, %c0_i32, %c0_i32_0 : i32, i32, i32
  }
  func.func @transform_2(%arg0: i32, %arg1: i32) -> (i32, i32, i32) {
    %c0_i32 = arith.constant 0 : i32
    %c0_i32_0 = arith.constant 0 : i32
    %c0_i32_1 = arith.constant 0 : i32
    return %arg0, %c0_i32, %c0_i32_0 : i32, i32, i32
  }
  func.func @transform_3(%arg0: i32, %arg1: i32) -> (i32, i32) {
    %c0_i32 = arith.constant 0 : i32
    %c0_i32_0 = arith.constant 0 : i32
    %c0_i32_1 = arith.constant 0 : i32
    return %c0_i32, %c0_i32_0 : i32, i32
  }
  func.func @transform_4(%arg0: i32, %arg1: i32) -> (i32, i32) {
    %c0_i32 = arith.constant 0 : i32
    %c0_i32_0 = arith.constant 0 : i32
    %c0_i32_1 = arith.constant 0 : i32
    return %c0_i32, %c0_i32_0 : i32, i32
  }
  func.func @transform_5(%arg0: i32, %arg1: i32) -> (i32, i32) {
    %c0_i32 = arith.constant 0 : i32
    %c0_i32_0 = arith.constant 0 : i32
    %c0_i32_1 = arith.constant 0 : i32
    return %c0_i32, %c0_i32_0 : i32, i32
  }
  func.func @transform_6(%arg0: i32, %arg1: i32) -> (i32, i32) {
    %c0_i32 = arith.constant 0 : i32
    %c0_i32_0 = arith.constant 0 : i32
    %c0_i32_1 = arith.constant 0 : i32
    return %c0_i32, %c0_i32_0 : i32, i32
  }
  func.func @transform_7(%arg0: i32, %arg1: i32) -> (i32, i32) {
    %c0_i32 = arith.constant 0 : i32
    %c0_i32_0 = arith.constant 0 : i32
    %c0_i32_1 = arith.constant 0 : i32
    return %c0_i32, %c0_i32_0 : i32, i32
  }
  func.func @transform_8(%arg0: i32, %arg1: i32) -> (i32, i32) {
    %c0_i32 = arith.constant 0 : i32
    %c0_i32_0 = arith.constant 0 : i32
    %c0_i32_1 = arith.constant 0 : i32
    return %c0_i32, %c0_i32_0 : i32, i32
  }
  func.func @transform_9(%arg0: i32, %arg1: i32) -> (i32, i32) {
    %c0_i32 = arith.constant 0 : i32
    %c0_i32_0 = arith.constant 0 : i32
    %c0_i32_1 = arith.constant 0 : i32
    return %c0_i32, %c0_i32_0 : i32, i32
  }
  func.func @transform_10(%arg0: i32, %arg1: i32) -> (i32, i32) {
    %c0_i32 = arith.constant 0 : i32
    %c0_i32_0 = arith.constant 0 : i32
    %c0_i32_1 = arith.constant 0 : i32
    return %c0_i32, %c0_i32_0 : i32, i32
  }
  func.func @transform_11(%arg0: i32, %arg1: i32) -> (i32, i32) {
    %c0_i32 = arith.constant 0 : i32
    %c0_i32_0 = arith.constant 0 : i32
    %c0_i32_1 = arith.constant 0 : i32
    return %c0_i32, %c0_i32_0 : i32, i32
  }
  func.func @transform_12(%arg0: i32, %arg1: i32) -> (i32, i32, i32) {
    %c0_i32 = arith.constant 0 : i32
    %c0_i32_0 = arith.constant 0 : i32
    return %arg0, %arg1, %c0_i32 : i32, i32, i32
  }
}

</mosaic_0001>

<bundles_post_ra>
// kernel: tpu_custom_call.1
= control target key start
LH: loop header
LB: loop body
LE: loop exit
PB: predicated region body
PF: predicated region fallthrough
CT: control target
= control target key end

     0   :  { %s2099_s0 = inlined_call_operand.hbm [shape: f32[2,8,32], index: 0, kind: input, shape index: {}]   ;;  %s2100_s1 = inlined_call_operand.hbm [shape: f32[2,8,32], index: 1, kind: input, shape index: {}]   ;;  %s2101_s2 = inlined_call_operand.hbm [shape: f32[2,8,32], index: 2, kind: input, shape index: {}]   ;;  %s2102_s3 = inlined_call_operand.hbm [shape: bf16[32,32], index: 3, kind: input, shape index: {}]   ;;  %s2103_s4 = inlined_call_operand.hbm [shape: bf16[32,32], index: 4, kind: input, shape index: {}]   ;;  %s2104_s5 = inlined_call_operand.hbm [shape: bf16[32,32], index: 5, kind: input, shape index: {}]   ;;  %s2105_s6 = inlined_call_operand.hbm [shape: bf16[32,32], index: 6, kind: input, shape index: {}]   ;;  %s2106_s7 = inlined_call_operand.vmem [shape: f32[1,32], index: 7, kind: input, shape index: {}]   ;;  %s2107_s8 = inlined_call_operand.vmem [shape: f32[1,32], index: 8, kind: input, shape index: {}]   ;;  %s2108_s9 = inlined_call_operand.vmem [shape: f32[1,32], index: 9, kind: input, shape index: {}]   ;;  %s2109_s10 = inlined_call_operand.vmem [shape: f32[1,32], index: 10, kind: input, shape index: {}]   ;;  %s2110_s11 = inlined_call_operand.vmem [shape: f32[1,8], index: 11, kind: input, shape index: {}]   ;;  %s2111_s12 = inlined_call_operand.hbm [shape: f32[2,8,32], index: 12, kind: output, shape index: {}]  }
   0x1   :  { %2126 = sst [smem:[#allocation31_spill]] %s2099_s0 }
   0x2   :  { %2127 = sst [smem:[#allocation32_spill]] %s2100_s1 }
   0x3   :  { %2128 = sst [smem:[#allocation33_spill]] %s2102_s3 }
   0x4   :  { %2129 = sst [smem:[#allocation34_spill]] %s2103_s4 }
   0x5   :  { %2130 = sst [smem:[#allocation35_spill]] %s2104_s5 }
   0x6   :  { %2131 = sst [smem:[#allocation36_spill]] %s2105_s6 }
   0x7   :  { %2132 = sst [smem:[#allocation37_spill]] %s2109_s10 }
   0x8   :  { %2133 = sst [smem:[#allocation38_spill]] %s2111_s12 }
   0x9   :  { %17 = vsyncpa [#allocation7], 0 }
   0xa   :  { %19 = vsyncpa [#allocation7 + $0x1], 0 }
   0xb   :  { %20 = vsyncpa [#allocation10], 0 }
   0xc   :  { %22 = vsyncpa [#allocation10 + $0x1], 0 }
   0xd   :  { %23 = vsyncpa [#allocation13], 0 }
   0xe   :  { %24 = vsyncpa [#allocation16], 0 }
   0xf   :  { %25 = vsyncpa [#allocation8], 0 }
  0x10   :  { %27 = vsyncpa [#allocation8 + $0x1], 0  ;;  %s1819_s21 = smov 0   ;;  %s1821_s22 = smov 0  }
  0x11   :  { %s1823_s23 = smov 0   ;;  %s1825_s24 = smov 0  }
  0x12   :  { %s1827_s25 = smov 0   ;;  %s1829_s26 = smov 0  }
  0x13 LB: > { %2134 = sst [smem:[#allocation24_spill]] %s1720_s21  ;;  %s1850_s27 = sadd.s32 4294967295, %s1740_s26   ;;  %s1740_s26 = sphi %s1829_s26, %s33_s26   ;;  %s1736_s25 = sphi %s1827_s25, %s2165_s25   ;;  %s1732_s24 = sphi %s1825_s24, %s2164_s24   ;;  %s1728_s23 = sphi %s1823_s23, %s2168_s23   ;;  %s1724_s22 = sphi %s1821_s22, %s2167_s22   ;;  %s1720_s21 = sphi %s1819_s21, %s2166_s21  }
  0x14   : > { %2135 = sst [smem:[#allocation25_spill]] %s1736_s25  ;;  %p1217_p0 = scmp.ge.s32.totalorder %s1740_s26, 1 }
  0x15   : > { %2136 = sst [smem:[#allocation26_spill]] %s1740_s26  ;;  %p68_p1 = scmp.eq.s32.totalorder %s1850_s27, 0 }
  0x16   : > { %p347_p2 = scmp.lt.s32.totalorder %s1740_s26, 3  ;;  %s2137_s3 = sld [smem:[#allocation33_spill]] }
  0x17   : > { %s1742_s14 = smov [#allocation12]   ;;  %p1222_p6 = scmp.ge.s32.totalorder %s1740_s26, 2 }
  0x18   : > { %p1858_p3 = pnand %p1217_p0, %p347_p2  ;;  %s360_s15 = sshll.u32 %s1742_s14, 4  ;;  %s361_s15 = int_to_ptr.vmem [resolvable:$true] %s360_s15 }
  0x19   : > { %s2140_s5 = sld [smem:[#allocation35_spill]]  ;;  %s2112_s20 = smov 64  }
  0x1a   : > { %p1318_p4 = pneg %p1858_p3  ;;  %s2114_s28 = smov 4  }
  0x1b   : > { %s1745_s29 = smov [#allocation15]   ;;  %s1216_s17 = sadd.s32 4294967294, %s1740_s26  }
  0x1c   : > { %s358_s30 = sshll.u32 %s2137_s3, 4  ;;  %p1866_p5 = pnand %p1318_p4, %p68_p1  ;;  %s359_s30 = int_to_ptr.hbm [resolvable:$true] %s358_s30 }
  0x1d   : > { %s388_s14 = sshll.u32 %s1745_s29, 4  ;;  %s45_s18 = sadd.s32 1, %s1736_s25  ;;  %s389_s14 = int_to_ptr.vmem [resolvable:$true] %s388_s14 }
  0x1e   : > { %1321 = dma.hbm_to_vmem [thread:$0]  (!%p1866_p5), %s359_s30, 256, %s361_s15, [#allocation13], %s2112_s20, %s2112_s20, %s2114_s28  }
  0x1f   : > { %s386_s19 = sshll.u32 %s2140_s5, 4  ;;  %p47_p7 = scmp.ge.s32.totalorder %s45_s18, 2  ;;  %s387_s19 = int_to_ptr.hbm [resolvable:$true] %s386_s19 }
  0x20   : > { %1327 = dma.hbm_to_vmem [thread:$0]  (!%p1866_p5), %s387_s19, 256, %s389_s14, [#allocation16], %s2112_s20, %s2112_s20, %s2114_s28  }
  0x21   : > { %s54_s3 = sadd.s32 1, %s1728_s23  ;;  %p61_p8 = scmp.ne.s32.totalorder %s1728_s23, %s1724_s22 }
  0x22   : > { %p62_p9 = scmp.eq.s32.totalorder %s1740_s26, 0  ;;  %s2170_s18 = smov (%p47_p7, %s45_s18), 0 }
  0x23   : > { %2141 = sst [smem:[#allocation27_spill]] %s2170_s18  ;;  %p67_p11 = scmp.ne.s32.totalorder %s1724_s22, %s1720_s21 }
  0x24   : > { %p1892_p10 = por %p62_p9, %p61_p8  ;;  %s49_s15 = ssub.s32 %s1736_s25, %s2170_s18 }
  0x25   : > { %p334_p12 = scmp.eq.s32.totalorder %s1850_s27, 1  ;;  %p52_p13 = scmp.eq.s32.totalorder %s49_s15, 0 }
  0x26   : > { %p1903_p0 = por %p68_p1, %p67_p11  ;;  %p340_p4 = scmp.eq.s32.totalorder %s1216_s17, 1 }
  0x27   : > { %p1907_p2 = por %p334_p12, %p61_p8  ;;  %p1349_p9 = scmp.lt.s32.totalorder %s1740_s26, 2 }
  0x28   : > { %s1912_s14 = scalar_select %p52_p13, %s1728_s23, %s54_s3  }
  0x29   : > { %s2144_s29 = scalar_select %p1907_p2, 1, 0 }
  0x2a   : > { %2146 = sst [smem:[#allocation29_spill]] %s1912_s14  ;;  %p1914_p7 = por %p340_p4, %p67_p11 }
  0x2b   : > { %2145 = sst [smem:[#allocation28_spill]] %s2144_s29  ;;  %s2120_s28 = sand.u32 1, %s1728_s23  }
  0x2c   : > { %s2147_s20 = scalar_select %p1914_p7, 1, 0 }
  0x2d   : > { %s1921_s5 = sshll.u32 %s1736_s25, 3  ;;  %s1925_s15 = sshll.u32 %s2120_s28, 3 }
  0x2e   : > { %2148 = sst [smem:[#allocation30_spill]] %s2147_s20  ;;  %p1929_p8 = pnand %p1349_p9, %p1892_p10 }
  0x2f   : > { %s451_s3 = sand.u32 1, %s1740_s26   ;;  %s2150_s1 = sld [smem:[#allocation32_spill]] }
  0x30   : > { %s455_s21 = scalar_lea.vmem [#allocation9], %s1925_s15  ;;  %s2151_s4 = sld [smem:[#allocation34_spill]] }
  0x31   : > { %s463_s25 = sshll.u32 %s455_s21, 4  ;;  %s452_s12 = scalar_lea.sflag [#allocation10], %s451_s3  ;;  %s464_s25 = int_to_ptr.vmem [resolvable:$true] %s463_s25 }
  0x32   : > { %s1746_s26 = smov [#allocation14]   ;;  %s2152_s6 = sld [smem:[#allocation36_spill]] }
  0x33   : > { %s374_s14 = sshll.u32 %s1746_s26, 4  ;;  %s2154_s28 = smov 64   ;;  %s375_s14 = int_to_ptr.vmem [resolvable:$true] %s374_s14 }
  0x34   : > { %s1747_s3 = smov [#allocation17]   ;;  %s2155_s0 = sld [smem:[#allocation31_spill]] }
  0x35   : > { %s459_s20 = scalar_lea.hbm %s2150_s1, %s1921_s5  ;;  %s435_s17 = scalar_lea.vmem [#allocation6], %s1925_s15 }
  0x36   : > { %s461_s10 = sshll.u32 %s459_s20, 4  ;;  %s372_s29 = sshll.u32 %s2151_s4, 4  ;;  %s462_s10 = int_to_ptr.hbm [resolvable:$true] %s461_s10  ;;  %s373_s29 = int_to_ptr.hbm [resolvable:$true] %s372_s29 }
  0x37   : > { %1337 = dma.hbm_to_vmem [thread:$0]  (!%p1929_p8), %s462_s10, 128, %s464_s25, %s452_s12  }
  0x38   : > { %s400_s21 = sshll.u32 %s2152_s6, 4  ;;  %s2153_s20 = smov 4   ;;  %s401_s21 = int_to_ptr.hbm [resolvable:$true] %s400_s21 }
  0x39   : > { %1324 = dma.hbm_to_vmem [thread:$0]  (!%p1866_p5), %s373_s29, 256, %s375_s14, [#allocation13], %s2154_s28, %s2154_s28, %s2153_s20  }
  0x3a   : > { %s402_s10 = sshll.u32 %s1747_s3, 4  ;;  %s440_s26 = scalar_lea.hbm %s2155_s0, %s1921_s5  ;;  %s403_s10 = int_to_ptr.vmem [resolvable:$true] %s402_s10 }
  0x3b   : > { %1330 = dma.hbm_to_vmem [thread:$0]  (!%p1866_p5), %s401_s21, 256, %s403_s10, [#allocation16], %s2154_s28, %s2154_s28, %s2153_s20  }
  0x3c   : > { %s442_s1 = sshll.u32 %s440_s26, 4  ;;  %s444_s4 = sshll.u32 %s435_s17, 4  ;;  %s443_s1 = int_to_ptr.hbm [resolvable:$true] %s442_s1  ;;  %s445_s4 = int_to_ptr.vmem [resolvable:$true] %s444_s4 }
  0x3d   : > { %s2156_s6 = sand.u32 1, %s1728_s23   ;;  %s478_s25 = scalar_lea.hbm %s2101_s2, %s1921_s5 }
  0x3e   : > { %s432_s29 = scalar_lea.sflag [#allocation7], %s2156_s6  ;;  %s480_s30 = sshll.u32 %s478_s25, 4  ;;  %s481_s30 = int_to_ptr.hbm [resolvable:$true] %s480_s30 }
  0x3f   : > { %1334 = dma.hbm_to_vmem [thread:$0]  (!%p1929_p8), %s443_s1, 128, %s445_s4, %s432_s29  }
  0x40   : > { %s474_s0 = scalar_lea.vmem [#allocation11], %s1925_s15  ;;  %491 = sbr.rel (%p1858_p3) target bundleno = 1170 (0x492), region = 68 }
  0x41   : > { %s482_s16 = sshll.u32 %s474_s0, 4  ;;  %s1976_s21 = sand.u32 (!%p1858_p3), 1, %s1724_s22   ;;  %s483_s16 = int_to_ptr.vmem [resolvable:$true] %s482_s16 }
  0x42   : > { %1340 = dma.hbm_to_vmem [thread:$0]  (!%p1929_p8), %s481_s30, 128, %s483_s16, %s452_s12  }
  0x43   : > { %s1979_s4 = sshll.u32 (!%p1858_p3), %s1976_s21, 3  ;;  %s494_s5 = scalar_lea.sflag (!%p1858_p3), [#allocation7], %s1976_s21 }
  0x44   : > { %s497_s6 = scalar_lea.vmem (!%p1858_p3), [#allocation6], %s1979_s4 }
  0x45   : > { %1699 = dma.done.wait (%p1903_p0), %s494_s5, 128  }
  0x46   : > { %1701 = vsyncadd (%p1903_p0), %s494_s5, 4294967168  ;;  %s503_s0 = sand.u32 1, %s1850_s27   ;;  %s507_s13 = scalar_lea.vmem [#allocation9], %s1979_s4 }
  0x47   : > { %s504_s12 = scalar_lea.sflag [#allocation10], %s503_s0 }
  0x48   : > { %1703 = dma.done.wait (%p1903_p0), %s504_s12, 256  }
  0x49   : > { %1705 = vsyncadd (%p1903_p0), %s504_s12, 4294967040  ;;  %s517_s18 = scalar_lea.vmem [#allocation11], %s1979_s4 }
  0x4a   : > { %1707 = dma.done.wait (%p68_p1), [#allocation13], 512  }
  0x4b   : > { %1709 = vsyncadd (%p68_p1), [#allocation13], 4294966784 }
  0x4c   : > { %1711 = dma.done.wait (%p68_p1), [#allocation16], 512  }
  0x4d   : > { %1713 = vsyncadd (%p68_p1), [#allocation16], 4294966784  ;;  %v1287_v0 = vld [vmem:[#allocation12 + $0x8] sm:$0xff]  ;;  %v1289_v1 = vld [vmem:[#allocation14 + $0x8] sm:$0xff]  ;;  %vm616_vm0 = vcmask 261120   ;;  %vm634_vm1 = vcmask 257024  }
  0x4e   : > { %v1286_v2 = vld [vmem:[#allocation12] sm:$0xff]  ;;  %v1288_v3 = vld [vmem:[#allocation14] sm:$0xff]  ;;  %626 = vmatpush.bf16.msra.mxu0 %v1287_v0  ;;  %665 = vmatpush.bf16.msra.mxu1 %v1289_v1  ;;  %vm719_vm2 = vcmask 64512   ;;  %s1748_s28 = smov 112   ;;  %s1749_s10 = smov 120   ;;  %v1291_v39 = vld [vmem:[#allocation15 + $0x8] sm:$0xff] }
  0x4f   : > { %v590_v4 = vld [vmem:[%s497_s6] sm:$0xff]  ;;  %v592_v5 = vld [vmem:[%s507_s13] sm:$0xff]  ;;  %s1750_s26 = smov 104   ;;  %703 = vmatpush.bf16.msra.mxu2 %v1291_v39  ;;  %vm754_vm3 = vcmask 1043456   ;;  %vm772_vm4 = vcmask 60416   ;;  %s1751_s3 = smov 8  }
  0x50   : > { %v591_v6 = vpack.c.bf16 %v590_v4, %v590_v4  ;;  %v593_v7 = vpack.c.bf16 %v592_v5, %v592_v5  ;;  %v1415_v8 = vld [vmem:[%s2106_s7] ss:$0 sm:$0xff]  ;;  %v594_v41 = vld [vmem:[%s517_s18] sm:$0xff]  ;;  %s1752_s25 = smov 24   ;;  %s1753_s30 = smov 16   ;;  %vm847_vm5 = vcmask 126016  }
  0x51   : > { %v1416_v9 = vld [vmem:[%s2107_s8] ss:$0 sm:$0xff]  ;;  %v595_v46 = vpack.c.bf16 %v594_v41, %v594_v41  ;;  %vm922_vm6 = vcmask 191616   ;;  %vm997_vm7 = vcmask 257216   ;;  %s1283_s16 = sshll.u32 %s1732_s24, 3  ;;  %s2157_s0 = sld [smem:[#allocation38_spill]] }
  0x52   : > { %627 = vmatpush.bf16.msra.mxu0 %v1286_v2  ;;  %666 = vmatpush.bf16.msra.mxu1 %v1288_v3  ;;  %v1290_v40 = vld [vmem:[#allocation15] sm:$0xff]  ;;  %s2159_s27 = sld [smem:[#allocation37_spill]]  ;;  %s588_s15 = scalar_lea.vmem [#allocation18], %s1979_s4 }
  0x53   : > { %704 = vmatpush.bf16.msra.mxu2 %v1290_v40  ;;  %v1417_v51 = vld [vmem:[%s2110_s11] ss:$0 sm:$0xff]  ;;  %s1051_s20 = sshll.u32 %s588_s15, 4  ;;  %s1052_s20 = int_to_ptr.vmem [resolvable:$true] %s1051_s20 }
  0x55   : > { %1246 = vmatmul.msk.bf16.vlgmr.msra.gmra.mxu0 %vm616_vm0, %v591_v6  ;;  %1255 = vmatmul.msk.bf16.vlgmr.msra.gmra.mxu1 %vm616_vm0, %v593_v7 }
  0x56   : > { %1264 = vmatmul.msk.bf16.vlgmr.msra.gmra.mxu2 %vm616_vm0, %v595_v46 }
  0x57   : > { %s1049_s13 = scalar_lea.hbm %s2157_s0, %s1283_s16  ;;  %s1666_s4 = scalar_lea.hbm %s2157_s0, 16 }
  0xd2   : > { %v629_v10 = vpop.f32.mrf.mxu0  ;;  %v668_v11 = vpop.f32.mrf.mxu1 }
  0xd3   : > { %v630_v12 = vadd.f32 %v1415_v8, %v629_v10  ;;  %v669_v13 = vadd.f32 %v1416_v9, %v668_v11  ;;  %v1418_v10 = vld [vmem:[%s2108_s9] ss:$0 sm:$0xff] }
  0xd5   : > { %v633_v14 = vpack.c.bf16 %v630_v12, %v630_v12  ;;  %v672_v15 = vpack.c.bf16 %v669_v13, %v669_v13 }
  0xd7   : > { %635 = vst.msk [vmem:[#allocation2] sm:$0xf] %vm634_vm1, %v633_v14 }
  0xd8   : > { %673 = vst.msk [vmem:[#allocation3] sm:$0xf] %vm634_vm1, %v672_v15 }
  0xd9   : > { %v706_v11 = vpop.f32.mrf.mxu2 }
  0xda   : > { %v631_v16 = vpop.f32.mrf.mxu0  ;;  %v670_v17 = vpop.f32.mrf.mxu1  ;;  %v707_v12 = vadd.f32 %v1418_v10, %v706_v11 }
  0xdc   : > { %v710_v13 = vpack.c.bf16 %v707_v12, %v707_v12  ;;  %v1293_v12 = vld [vmem:[#allocation17 + $0x8] sm:$0xff] }
  0xde   : > { %v849_v18 = vld [vmem:[#allocation2] sm:$0xf]  ;;  %711 = vst.msk [vmem:[#allocation4] sm:$0xf] %vm634_vm1, %v710_v13  ;;  %v1292_v13 = vld [vmem:[#allocation17] sm:$0xff] }
  0xdf   : > { %v714_v19 = vld [vmem:[#allocation3] sm:$0xf]  ;;  %v853_v22 = vunpack.c.l.b16 %v849_v18  ;;  %v924_v26 = vld [vmem:[#allocation2] sm:$0xf] }
  0xe0   : > { %v850_v20 = vld [vmem:[#allocation3] sm:$0xf]  ;;  %v724_v23 = vsel %vm719_vm2, %v714_v19, 0  ;;  %v774_v28 = vld [vmem:[#allocation2] sm:$0xf]  ;;  %v928_v32 = vunpack.c.l.b16 %v924_v26 }
  0xe1   : > { %v775_v21 = vld [vmem:[#allocation3] sm:$0xf]  ;;  %v858_v24 = vunpack.c.l.b16 %v850_v20  ;;  %733 = vmatpush.bf16.xpose.msra.mxu3 %v724_v23  ;;  %v854_v27 = vpack.c.b16 %v853_v22, %v853_v22  ;;  %v778_v33 = vunpack.c.l.b16 %v774_v28  ;;  %v713_v34 = vld [vmem:[#allocation2] sm:$0xf]  ;;  %v708_v14 = vpop.f32.mrf.mxu2 }
  0xe2   : > { %v783_v25 = vunpack.c.l.b16 %v775_v21  ;;  %v925_v31 = vld [vmem:[#allocation3] sm:$0xf]  ;;  %v929_v36 = vpack.c.b16 %v928_v32, %v928_v32 }
  0xe3   : > { %v859_v29 = vpack.c.b16 %v858_v24, %v858_v24  ;;  %855 = vrot.lane.b32.xlu2 %v854_v27, %s1748_s28  ;;  %v933_v35 = vunpack.c.l.b16 %v925_v31  ;;  %v779_v37 = vpack.c.b16 %v778_v33, %v778_v33 }
  0xe4   : > { %v784_v30 = vpack.c.b16 %v783_v25, %v783_v25 }
  0xe5   : > { %860 = vrot.lane.b32.xlu1 %v859_v29, %s1748_s28  ;;  %v934_v38 = vpack.c.b16 %v933_v35, %v933_v35  ;;  %v715_v15 = vld [vmem:[#allocation4] sm:$0xf] }
  0xe6   : > { %785 = vrot.lane.b32.xlu0 %v784_v30, %s1749_s10  ;;  %v756_v16 = vsel %vm754_vm3, %v715_v15, 0  ;;  %v776_v20 = vld [vmem:[#allocation4] sm:$0xf] }
  0xe7   : > { %765 = vmatpush.bf16.msrb.mxu0 %v756_v16  ;;  %v819_v21 = vunpack.c.l.b16 %v776_v20  ;;  %v926_v39 = vld [vmem:[#allocation4] sm:$0xf] }
  0xe8   : > { %1265 = vmatmul.msk.bf16.vlgmr.msra.gmra.mxu3 %vm719_vm2, %v713_v34  ;;  %v969_v40 = vunpack.c.l.b16 %v926_v39 }
  0xe9   : > { %v820_v22 = vpack.c.b16 %v819_v21, %v819_v21 }
  0xea   : > { %v970_v41 = vpack.c.b16 %v969_v40, %v969_v40 }
  0xeb   : > { %930 = vrot.lane.b32.xlu2 %v929_v36, %s1750_s26 }
  0xed   : > { %935 = vrot.lane.b32.xlu1 %v934_v38, %s1750_s26 }
  0xee   : > { %780 = vrot.lane.b32.xlu0 %v779_v37, %s1749_s10 }
 0x13d   : > { %v856_v47 = vpop.permute.xlu2 %855 }
 0x145   : > { %v931_v54 = vpop.permute.xlu2 %930 }
 0x157   : > { %v861_v42 = vpop.permute.xlu1 %860 }
 0x158   : > { %v786_v43 = vpop.permute.xlu0 %785  ;;  %v866_v45 = vsel %vm719_vm2, %v861_v42, 0  ;;  %v851_v42 = vld [vmem:[#allocation4] sm:$0xf] }
 0x159   : > { %v791_v44 = vsel %vm719_vm2, %v786_v43, 0  ;;  %875 = vmatpush.bf16.xpose.msrb.mxu3 %v866_v45  ;;  %v894_v43 = vunpack.c.l.b16 %v851_v42 }
 0x15a   : > { %800 = vmatpush.bf16.xpose.msrb.mxu1 %v791_v44 }
 0x15b   : > { %v895_v44 = vpack.c.b16 %v894_v43, %v894_v43 }
 0x15f   : > { %v936_v48 = vpop.permute.xlu1 %935 }
 0x160   : > { %v781_v49 = vpop.permute.xlu0 %780  ;;  %v941_v50 = vsel %vm719_vm2, %v936_v48, 0  ;;  %1269 = vmatmul.msk.bf16.vlgmr.msrb.gmra.mxu3 %vm719_vm2, %v856_v47 }
 0x161   : > { %1267 = vmatmul.msk.bf16.vlgmr.msrb.gmra.mxu1 %vm719_vm2, %v781_v49  ;;  %1029 = vmatpush.bf16.msra.mxu3 %v1293_v12 }
 0x162   : > { %950 = vmatpush.bf16.xpose.msra.mxu1 %v941_v50 }
 0x165   : > { %1030 = vmatpush.bf16.msra.mxu3 %v1292_v13 }
 0x16b   : > { %v735_v52 = vpop.f32.mrf.mxu3 }
 0x16c   : > { %v736_v53 = vadd.f32 %v1417_v51, %v735_v52 }
 0x16e   : > { %v739_v55 = vsel %vm719_vm2, %v736_v53, -inf }
 0x16f   : > { %740 = vmax.xlane.f32.xlu1 %v739_v55 }
 0x171   : > { %1271 = vmatmul.msk.bf16.vlgmr.msra.gmra.mxu1 %vm719_vm2, %v931_v54 }
 0x173   : > { %v737_v56 = vpop.f32.mrf.mxu3 }
 0x1de   : > { %v802_v57 = vpop.f32.mrf.mxu1 }
 0x1df   : > { %v803_v58 = vadd.f32 %v1417_v51, %v802_v57 }
 0x1e1   : > { %v806_v59 = vsel %vm719_vm2, %v803_v58, -inf }
 0x1e2   : > { %807 = vmax.xlane.f32.xlu0 %v806_v59  ;;  %v741_v61 = vpop.xlane.xlu1 %740 }
 0x1e3   : > { %v877_v60 = vpop.f32.mrf.mxu3  ;;  %v742_v62 = vsub.f32 %v736_v53, %v741_v61 }
 0x1e4   : > { %v878_v7 = vadd.f32 %v1417_v51, %v877_v60 }
 0x1e5   : > { %v743_v0 = vmul.f32 1.442695, %v742_v62 }
 0x1e6   : > { %v804_v63 = vpop.f32.mrf.mxu1  ;;  %v881_v9 = vsel %vm719_vm2, %v878_v7, -inf }
 0x1e7   : > { %1420 = vpow2.f32 %v743_v0 }
 0x1eb   : > { %v879_v1 = vpop.f32.mrf.mxu3 }
 0x1ed   : > { %v1421_v3 = vpop.eup %1420 }
 0x1ee   : > { %v952_v2 = vpop.f32.mrf.mxu1  ;;  %v745_v5 = vsel %vm719_vm2, %v1421_v3, 0.0 }
 0x1ef   : > { %v953_v4 = vadd.f32 %v1417_v51, %v952_v2  ;;  %746 = vadd.xlane.f32.xlu1 %v745_v5 }
 0x1f1   : > { %v956_v6 = vsel %vm719_vm2, %v953_v4, -inf }
 0x1f2   : > { %957 = vmax.xlane.f32.xlu2 %v956_v6 }
 0x1f6   : > { %v954_v8 = vpop.f32.mrf.mxu1 }
 0x1fa   : > { %882 = vmax.xlane.f32.xlu2 %v881_v9 }
 0x212   : > { %821 = vrot.lane.b32.xlu2 %v820_v22, %s1749_s10  ;;  %s1038_s10 = scalar_lea.sflag [#allocation8], %s1976_s21 }
 0x255   : > { %v808_v17 = vpop.xlane.xlu0 %807 }
 0x256   : > { %v809_v18 = vsub.f32 %v803_v58, %v808_v17  ;;  %v1419_v17 = vld [vmem:[%s2159_s27] ss:$0 sm:$0xff] }
 0x258   : > { %v810_v19 = vmul.f32 1.442695, %v809_v18 }
 0x25a   : > { %1422 = vpow2.f32 %v810_v19 }
 0x260   : > { %v1423_v23 = vpop.eup %1422 }
 0x261   : > { %v812_v24 = vsel %vm719_vm2, %v1423_v23, 0.0 }
 0x262   : > { %813 = vadd.xlane.f32.xlu0 %v812_v24  ;;  %v747_v25 = vpop.xlane.xlu1 %746 }
 0x263   : > { %1424 = vrcp.f32 %v747_v25 }
 0x265   : > { %v958_v26 = vpop.xlane.xlu2 %957 }
 0x266   : > { %v959_v27 = vsub.f32 %v953_v4, %v958_v26 }
 0x268   : > { %v960_v28 = vmul.f32 1.442695, %v959_v27 }
 0x269   : > { %v1425_v29 = vpop.eup %1424 }
 0x26a   : > { %1426 = vpow2.f32 %v960_v28  ;;  %v749_v30 = vmul.f32 %v1425_v29, %v1421_v3 }
 0x26c   : > { %v750_v33 = vpack.c.bf16 %v749_v30, %v749_v30 }
 0x26d   : > { %v883_v31 = vpop.xlane.xlu2 %882 }
 0x26e   : > { %v884_v32 = vsub.f32 %v878_v7, %v883_v31  ;;  %1266 = vmatmul.msk.bf16.vlgmr.msrb.gmra.mxu0 %vm719_vm2, %v750_v33 }
 0x270   : > { %v1427_v34 = vpop.eup %1426  ;;  %v885_v35 = vmul.f32 1.442695, %v884_v32 }
 0x271   : > { %v962_v36 = vsel %vm719_vm2, %v1427_v34, 0.0 }
 0x272   : > { %1428 = vpow2.f32 %v885_v35  ;;  %963 = vadd.xlane.f32.xlu0 %v962_v36 }
 0x275   : > { %v822_v45 = vpop.permute.xlu2 %821 }
 0x276   : > { %v827_v46 = vsel %vm754_vm3, %v822_v45, 0 }
 0x277   : > { %836 = vmatpush.bf16.msrb.mxu2 %v827_v46 }
 0x278   : > { %v1429_v37 = vpop.eup %1428 }
 0x279   : > { %v887_v38 = vsel %vm719_vm2, %v1429_v37, 0.0 }
 0x27a   : > { %888 = vadd.xlane.f32.xlu1 %v887_v38 }
 0x286   : > { %971 = vrot.lane.b32.xlu0 %v970_v41, %s1750_s26 }
 0x293   : > { %896 = vrot.lane.b32.xlu1 %v895_v44, %s1748_s28  ;;  %s1053_s28 = sshll.u32 %s1049_s13, 4  ;;  %s1054_s28 = int_to_ptr.hbm [resolvable:$true] %s1053_s28 }
 0x294   : > { %s1660_s24 = sshra.s32 %s1054_s28, 4  ;;  %s1661_s24 = int_to_ptr.hbm [resolvable:$true] %s1660_s24 }
 0x295   : > { %s1662_s26 = scalar_lea.hbm %s1661_s24, 8  ;;  %p1667_p10 = scmp.lt.s32.totalorder %s1661_s24, %s2157_s0 }
 0x296   : > { %p1663_p1 = scmp.ne.s32.totalorder %s1661_s24, %s1662_s26  ;;  %p1668_p11 = scmp.lt.s32.totalorder %s1666_s4, %s1662_s26 }
 0x298   : > { %p1664_p3 = pnand %p1663_p1, %p1907_p2  ;;  %p1669_p12 = por %p1668_p11, %p1667_p10 }
 0x29a   : > { %p1665_p5 = pneg %p1664_p3 }
 0x29c   : > { %p1670_p13 = pnand %p1669_p12, %p1665_p5 }
 0x2d5   : > { %v814_v47 = vpop.xlane.xlu0 %813 }
 0x2d6   : > { %1430 = vrcp.f32 %v814_v47 }
 0x2dc   : > { %v1431_v48 = vpop.eup %1430 }
 0x2dd   : > { %v816_v49 = vmul.f32 %v1431_v48, %v1423_v23 }
 0x2df   : > { %v817_v50 = vpack.c.bf16 %v816_v49, %v816_v49 }
 0x2e1   : > { %1268 = vmatmul.msk.bf16.vlgmr.msrb.gmra.mxu2 %vm719_vm2, %v817_v50 }
 0x2e5   : > { %v964_v51 = vpop.xlane.xlu0 %963 }
 0x2e6   : > { %1432 = vrcp.f32 %v964_v51 }
 0x2eb   : > { %v767_v52 = vpop.f32.mrf.mxu0 }
 0x2ec   : > { %v771_v53 = vpack.c.bf16 %v767_v52, %v767_v52  ;;  %v1433_v54 = vpop.eup %1432 }
 0x2ed   : > { %v966_v56 = vmul.f32 %v1433_v54, %v1427_v34  ;;  %v889_v57 = vpop.xlane.xlu1 %888 }
 0x2ee   : > { %773 = vst.msk [vmem:[#allocation5] sm:$0xf] %vm772_vm4, %v771_v53  ;;  %1434 = vrcp.f32 %v889_v57 }
 0x2ef   : > { %v967_v60 = vpack.c.bf16 %v966_v56, %v966_v56 }
 0x2f3   : > { %v769_v55 = vpop.f32.mrf.mxu0 }
 0x2f4   : > { %v1435_v61 = vpop.eup %1434 }
 0x2f5   : > { %v891_v62 = vmul.f32 %v1435_v61, %v1429_v37 }
 0x2f7   : > { %v892_v1 = vpack.c.bf16 %v891_v62, %v891_v62 }
 0x2f8   : > { %v972_v58 = vpop.permute.xlu0 %971 }
 0x2f9   : > { %v977_v59 = vsel %vm754_vm3, %v972_v58, 0 }
 0x2fa   : > { %986 = vmatpush.bf16.msra.mxu2 %v977_v59 }
 0x2fd   : > { %1272 = vmatmul.msk.bf16.vlgmr.msra.gmra.mxu2 %vm719_vm2, %v967_v60 }
 0x305   : > { %v897_v63 = vpop.permute.xlu1 %896 }
 0x306   : > { %v902_v0 = vsel %vm754_vm3, %v897_v63, 0 }
 0x307   : > { %911 = vmatpush.bf16.msra.mxu0 %v902_v0 }
 0x30a   : > { %1270 = vmatmul.msk.bf16.vlgmr.msra.gmra.mxu0 %vm719_vm2, %v892_v1 }
 0x364   : > { %v838_v2 = vpop.f32.mrf.mxu2 }
 0x365   : > { %v842_v3 = vpack.c.bf16 %v838_v2, %v838_v2 }
 0x367   : > { %844 = vrot.lane.b32.xlu2 %v842_v3, %s1751_s3 }
 0x36c   : > { %v840_v4 = vpop.f32.mrf.mxu2 }
 0x380   : > { %v988_v5 = vpop.f32.mrf.mxu2 }
 0x381   : > { %v992_v6 = vpack.c.bf16 %v988_v5, %v988_v5 }
 0x383   : > { %994 = vrot.lane.b32.xlu2 %v992_v6, %s1752_s25 }
 0x387   : > { %v913_v7 = vpop.f32.mrf.mxu0 }
 0x388   : > { %v917_v8 = vpack.c.bf16 %v913_v7, %v913_v7  ;;  %v990_v9 = vpop.f32.mrf.mxu2 }
 0x38a   : > { %919 = vrot.lane.b32.xlu0 %v917_v8, %s1753_s30 }
 0x38f   : > { %v915_v10 = vpop.f32.mrf.mxu0 }
 0x3c1   : > { %v845_v11 = vpop.permute.xlu2 %844 }
 0x3c2   : > { %848 = vst.msk [vmem:[#allocation5] sm:$0xf] %vm847_vm5, %v845_v11 }
 0x3dd   : > { %v995_v15 = vpop.permute.xlu2 %994 }
 0x3fc   : > { %v920_v14 = vpop.permute.xlu0 %919 }
 0x3fd   : > { %923 = vst.msk [vmem:[#allocation5] sm:$0xf] %vm922_vm6, %v920_v14 }
 0x3fe   : > { %998 = vst.msk [vmem:[#allocation5] sm:$0xf] %vm997_vm7, %v995_v15 }
 0x405   : > { %v999_v16 = vld [vmem:[#allocation5] sm:$0xf] }
 0x406   : > { %1281 = vmatmul.msk.bf16.vlgmr.msra.gmra.mxu3 %vm616_vm0, %v999_v16 }
 0x489   : > { %v1032_v18 = vpop.f32.mrf.mxu3 }
 0x48a   : > { %v1033_v19 = vadd.f32 %v1419_v17, %v1032_v18 }
 0x48c   : > { %1036 = vst.msk [vmem:[%s588_s15] sm:$0xff] %vm616_vm0, %v1033_v19 }
 0x48d   : > { %1673 = shalt.err (!%p1670_p13)
}
 0x48e   : > { %1316 = dma.vmem_to_hbm [thread:$0]  (%p1907_p2), %s1052_s20, 128, %s1054_s28, %s1038_s10  }
 0x491   : > { %v1034_v20 = vpop.f32.mrf.mxu3 }
 0x492 PF: > { %s2160_s21 = sld [smem:[#allocation24_spill]]  ;;  %p1342_p0 = pnand %p1222_p6, %p1914_p7 }
 0x493   : > { %s2162_s25 = sld [smem:[#allocation26_spill]] }
 0x494   : > { %p1343_p4 = pneg %p1342_p0 }
 0x498   : > { %s1065_s30 = sand.u32 1, %s2160_s21  }
 0x499   : > { %s1066_s16 = scalar_lea.sflag [#allocation8], %s1065_s30 }
 0x49a   : > { %1715 = dma.done.wait (%p1343_p4), %s1066_s16, 128  }
 0x49b   : > { %1717 = vsyncadd (%p1343_p4), %s1066_s16, 4294967168  ;;  %s33_s26 = sadd.s32 1, %s2162_s25   ;;  %s2163_s5 = sld [smem:[#allocation29_spill]] }
 0x49c   : > { %p30_p9 = scmp.ge.s32.totalorder %s33_s26, 4   ;;  %s2164_s24 = sld [smem:[#allocation25_spill]] }
 0x49d   : > { %s2165_s25 = sld [smem:[#allocation27_spill]]  ;;  %s2166_s21 = smov %s1724_s22 }
 0x49e   : > { %s2167_s22 = smov %s1728_s23  ;;  %32 = sbr.rel (!%p30_p9) target bundleno = 19 (0x13), region = 153 }
 0x4a1   : > { %s2168_s23 = smov %s2163_s5 }
 0x4a3   :  { %1072 = vsyncpa [#allocation7], 1 }
 0x4a4   :  { %1074 = vsyncpa [#allocation7 + $0x1], 1 }
 0x4a5   :  { %1075 = vsyncpa [#allocation10], 1 }
 0x4a6   :  { %1077 = vsyncpa [#allocation10 + $0x1], 1 }
 0x4a7   :  { %1078 = vsyncpa [#allocation13], 1 }
 0x4a8   :  { %1079 = vsyncpa [#allocation16], 1 }
 0x4a9   :  { %1080 = vsyncpa [#allocation8], 1 }
 0x4aa   :  { %1082 = vsyncpa [#allocation8 + $0x1], 1 }

</bundles_post_ra>
